<compile_context>
chip_gen: v7x
topology: tpu7x:2x2x1
jax: 0.10.0
libtpu: 0.0.40
codegen_flags: <defaults>
</compile_context>

<pallas_src>
import math

import jax
import jax.numpy as jnp
from jax.experimental import pallas as pl
from jax.experimental.pallas import tpu as pltpu


def _three_to_one_kernel(w_ref, x_ref, o_ref):
    # w_ref: (3,)        post-softmax weights, f32 scalars in SMEM.
    # x_ref: (3, 8, tm)  channel-major input slab in VMEM (dense (8,128) vregs).
    # o_ref: (8, tm)     dense output slab in VMEM (full-lane, full-sublane vst).
    # Index channel rows straight from the ref (no whole-tile temp); the astype
    # is a no-op for f32 inputs and an upcast for sub-32-bit inputs.  Pure VPU
    # FMAs — no MXU (K=3 would waste the systolic array), no XLU.
    acc = w_ref[0] * x_ref[0].astype(jnp.float32)
    acc = acc + w_ref[1] * x_ref[1].astype(jnp.float32)
    acc = acc + w_ref[2] * x_ref[2].astype(jnp.float32)
    o_ref[...] = acc.astype(o_ref.dtype)


def _three_to_one_flat_channel_major(xc, w_sm, *, tn_lanes=16384):
    """xc: (3, N) channel-major input; w_sm: (3,) post-softmax weights -> (N,)."""
    _, n = xc.shape

    # Pad N to a multiple of 8 so it can be folded into dense sublanes.
    n_pad = ((n + 7) // 8) * 8
    if n_pad != n:
        xc = jnp.pad(xc, ((0, 0), (0, n_pad - n)))
    m = n_pad // 8
    x3 = xc.reshape(3, 8, m)  # free row-major metadata reshape

    # Lane tile: full extent for small m (legal, equals the array dim); else a
    # multiple of 128, capped so the grid keeps >= 4 blocks for v7x's two TCs.
    # Default tn_lanes=16384 -> 128K outputs/step, ~4 MiB double-buffered VMEM
    # (safe on v5e/v6e/v7x); raise on v6e/v7x for even fewer grid steps.
    if m <= 4 * 128:
        tm = m
    else:
        tm = min(tn_lanes, -(-m // 4))
        tm = max(128, (tm // 128) * 128)
    num_blocks = pl.cdiv(m, tm)

    itemsize = jnp.dtype(xc.dtype).itemsize
    cost = pl.CostEstimate(
        flops=5 * n,
        transcendentals=0,
        bytes_accessed=4 * n * itemsize + 3 * 4,  # 3N read + N write + weights
    )

    out = pl.pallas_call(
        _three_to_one_kernel,
        out_shape=jax.ShapeDtypeStruct((8, m), xc.dtype),
        grid_spec=pltpu.PrefetchScalarGridSpec(
            num_scalar_prefetch=0,
            grid=(num_blocks,),
            in_specs=[
                pl.BlockSpec(memory_space=pltpu.MemorySpace.SMEM),  # weights
                pl.BlockSpec((3, 8, tm), lambda i: (0, 0, i)),      # x slab
            ],
            out_specs=pl.BlockSpec((8, tm), lambda i: (0, i)),
        ),
        compiler_params=pltpu.CompilerParams(
            dimension_semantics=("parallel",),
        ),
        cost_estimate=cost,
    )(w_sm, x3)

    return out.reshape(n_pad)[:n]


def three_to_one_channel_major(xc, weights, *, tn_lanes=16384):
    """Preferred entry point: xc of shape (3, ...) channel-first -> shape (...).

    No transpose / extra HBM traffic: the kernel consumes channel-major data
    directly in dense (8, lanes) tiles.
    """
    assert xc.shape[0] == 3, "expects channel-first input with 3 channels"
    lead = xc.shape[1:]
    n = math.prod(lead) if lead else 1
    w_sm = jax.nn.softmax(weights.astype(jnp.float32), axis=-1).reshape(3)
    out = _three_to_one_flat_channel_major(
        xc.reshape(3, n), w_sm, tn_lanes=tn_lanes)
    return out.reshape(lead)


def three_to_one(x, weights, *, tn_lanes=16384, min_pallas_n=1 << 18):
    """PyTorch ThreeToOne.forward: x (..., 3), raw weights (1, 3) -> (..., 1)."""
    assert x.shape[-1] == 3, "ThreeToOne expects last dim == 3"
    lead = x.shape[:-1]
    n = math.prod(lead) if lead else 1

    # Constant per call: softmax once, in f32 (matches F.softmax on the param).
    w_sm = jax.nn.softmax(weights.astype(jnp.float32), axis=-1).reshape(3)

    if n < min_pallas_n:
        # Small inputs: a standalone kernel plus channel-major layout plumbing
        # costs more than a trivially fused XLA elementwise combine.
        out = (x.astype(jnp.float32) @ w_sm.reshape(3, 1)).astype(x.dtype)
        return out.reshape(*lead, 1)

    # Channel-major layout plumbing for PyTorch's channels-last convention.
    # TODO(synk): have the producer emit (3, N) channel-major (or fuse this op
    # into it) so this transpose pass — ~60% of the op's HBM traffic — vanishes.
    xc = jnp.transpose(x.reshape(n, 3))  # (3, n)
    out = _three_to_one_flat_channel_major(xc, w_sm, tn_lanes=tn_lanes)
    return out.reshape(*lead, 1).astype(x.dtype)


if __name__ == "__main__":
    key = jax.random.PRNGKey(0)
    k1, k2 = jax.random.split(key)

    # Deterministic parameter matching nn.Parameter(torch.ones(1, 3) / 3).
    weights = jnp.ones((1, 3), dtype=jnp.float32) / 3.0
    w_sm = jax.nn.softmax(weights, axis=-1)

    # 1) PyTorch-semantic call at a small shape, forced through the Pallas path.
    x = jax.random.normal(k1, (2, 16, 3), dtype=jnp.float32)
    out = jax.block_until_ready(three_to_one(x, weights, min_pallas_n=0))
    ref = x @ w_sm.T
    assert out.shape == (2, 16, 1), out.shape
    assert jnp.allclose(out, ref, atol=1e-6), "mismatch vs reference (small)"

    # 2) Channel-major (preferred, zero-transpose) path: non-multiple-of-8 N and
    #    a ragged lane tail across a multi-block grid (m=601, tm=128 -> 5 blocks).
    xc = jax.random.normal(k2, (3, 4801), dtype=jnp.float32)
    out_cf = jax.block_until_ready(
        three_to_one_channel_major(xc, weights, tn_lanes=128))
    ref_cf = jnp.einsum("c,cn->n", w_sm.reshape(3), xc)
    assert out_cf.shape == (4801,), out_cf.shape
    assert jnp.allclose(out_cf, ref_cf, atol=1e-5), "mismatch vs reference (cf)"

    # 3) Small-n plain-XLA fallback (no kernel launch), default threshold.
    out_small = jax.block_until_ready(three_to_one(x, weights))
    assert jnp.allclose(out_small, ref, atol=1e-6), "mismatch vs reference (xla)"

    print("KERNEL_OK")
</pallas_src>

<mosaic_0001>
module attributes {stable_mosaic.version = 11 : i64} {
  func.func @_three_to_one_kernel(%arg0: i32, %arg1: memref<3xf32, #tpu.memory_space<smem>>, %arg2: memref<3x8x4xf32, #tpu.memory_space<vmem>>, %arg3: memref<8x4xf32, #tpu.memory_space<vmem>>) attributes {dimension_semantics = [#tpu.dimension_semantics<parallel>], iteration_bounds = array<i64: 1>, scalar_prefetch = 0 : i64, scratch_operands = 0 : i64, tpu.core_type = #tpu.core_type<tc>, window_params = [{transform_indices = @transform_0, window_bounds = array<i64: 3>}, {transform_indices = @transform_1, window_bounds = array<i64: 3, 8, 4>}, {transform_indices = @transform_2, window_bounds = array<i64: 8, 4>}]} {
    %c0 = arith.constant 0 : index
    %0 = memref.load %arg1[%c0] : memref<3xf32, #tpu.memory_space<smem>>
    %c0_0 = arith.constant 0 : index
    %c0_1 = arith.constant 0 : index
    %c0_2 = arith.constant 0 : index
    %1 = vector.load %arg2[%c0_0, %c0_1, %c0_2] : memref<3x8x4xf32, #tpu.memory_space<vmem>>, vector<1x8x4xf32>
    %2 = vector.shape_cast %1 : vector<1x8x4xf32> to vector<8x4xf32>
    %3 = vector.broadcast %0 : f32 to vector<8x4xf32>
    %4 = arith.mulf %3, %2 : vector<8x4xf32>
    %c1 = arith.constant 1 : index
    %5 = memref.load %arg1[%c1] : memref<3xf32, #tpu.memory_space<smem>>
    %c1_3 = arith.constant 1 : index
    %c0_4 = arith.constant 0 : index
    %c0_5 = arith.constant 0 : index
    %6 = vector.load %arg2[%c1_3, %c0_4, %c0_5] : memref<3x8x4xf32, #tpu.memory_space<vmem>>, vector<1x8x4xf32>
    %7 = vector.shape_cast %6 : vector<1x8x4xf32> to vector<8x4xf32>
    %8 = vector.broadcast %5 : f32 to vector<8x4xf32>
    %9 = arith.mulf %8, %7 : vector<8x4xf32>
    %10 = arith.addf %4, %9 : vector<8x4xf32>
    %c2 = arith.constant 2 : index
    %11 = memref.load %arg1[%c2] : memref<3xf32, #tpu.memory_space<smem>>
    %c2_6 = arith.constant 2 : index
    %c0_7 = arith.constant 0 : index
    %c0_8 = arith.constant 0 : index
    %12 = vector.load %arg2[%c2_6, %c0_7, %c0_8] : memref<3x8x4xf32, #tpu.memory_space<vmem>>, vector<1x8x4xf32>
    %13 = vector.shape_cast %12 : vector<1x8x4xf32> to vector<8x4xf32>
    %14 = vector.broadcast %11 : f32 to vector<8x4xf32>
    %15 = arith.mulf %14, %13 : vector<8x4xf32>
    %16 = arith.addf %10, %15 : vector<8x4xf32>
    %c0_9 = arith.constant 0 : index
    %c0_10 = arith.constant 0 : index
    %17 = vector.load %arg3[%c0_9, %c0_10] : memref<8x4xf32, #tpu.memory_space<vmem>>, vector<8x4xf32>
    tpu.vector_store %arg3[%c0_9, %c0_10], %16 {strides = array<i32>} : memref<8x4xf32, #tpu.memory_space<vmem>>, vector<8x4xf32>,
    return
  }
  func.func @transform_0(%arg0: i32) -> i32 {
    %c0_i32 = arith.constant 0 : i32
    %c0_i32_0 = arith.constant 0 : i32
    return %c0_i32 : i32
  }
  func.func @transform_1(%arg0: i32) -> (i32, i32, i32) {
    %c0_i32 = arith.constant 0 : i32
    %c0_i32_0 = arith.constant 0 : i32
    %c0_i32_1 = arith.constant 0 : i32
    return %c0_i32, %c0_i32_0, %arg0 : i32, i32, i32
  }
  func.func @transform_2(%arg0: i32) -> (i32, i32) {
    %c0_i32 = arith.constant 0 : i32
    %c0_i32_0 = arith.constant 0 : i32
    return %c0_i32, %arg0 : i32, i32
  }
}

</mosaic_0001>

<bundles_post_ra>
// kernel: tpu_custom_call.1
= control target key start
LH: loop header
LB: loop body
LE: loop exit
PB: predicated region body
PF: predicated region fallthrough
CT: control target
= control target key end

     0   :  { %7 = vsyncpa [#allocation3], 0  ;;  %s97_s0 = inlined_call_operand.vmem [shape: f32[3], index: 0, kind: input, shape index: {}]   ;;  %s98_s1 = inlined_call_operand.vmem [shape: f32[3,8,4], index: 1, kind: input, shape index: {}]   ;;  %s99_s2 = inlined_call_operand.vmem [shape: f32[8,4], index: 2, kind: output, shape index: {}]  }
   0x1   :  { %s14_s11 = sshll.u32 %s97_s0, 4  ;;  %s15_s11 = int_to_ptr.vmem [resolvable:$true] %s14_s11 }
   0x2   :  { %s52_s12 = scalar_lea.vmem %s15_s11, 16  ;;  %p57_p1 = scmp.lt.s32.totalorder %s15_s11, %s15_s11 }
   0x3   :  { %p53_p0 = scmp.ne.s32.totalorder %s15_s11, %s52_s12  ;;  %p58_p2 = scmp.lt.s32.totalorder %s52_s12, %s52_s12 }
   0x5   :  { %p59_p3 = por %p58_p2, %p57_p1 }
   0x7   :  { %p60_p4 = pnand %p59_p3, %p53_p0 }
   0x9   :  { %63 = shalt.err (!%p60_p4)
}
   0xa   :  { %s66_s13 = smov [#allocation2]  }
   0xb   :  { %17 = dma.vmem_to_smem %s15_s11, 16, %s66_s13, [#allocation3]  }
   0xc   :  { %64 = dma.done.wait [#allocation3], 16  }
   0xd   :  { %65 = vsyncadd [#allocation3], 4294967280 }
   0xe   :  { %23 = sfence }
   0xf   :  { %s24_s14 = sld [smem:[#allocation2]]  ;;  %s47_s15 = sld [smem:[#allocation2 + $0x1]]  ;;  %v25_v0 = vld [vmem:[%s98_s1] sm:$0xff]  ;;  %v48_v1 = vld [vmem:[%s98_s1 + $0x8] sm:$0xff]  ;;  %v50_v2 = vld [vmem:[%s98_s1 + $0x10] sm:$0xff]  ;;  %vm40_vm0 = vcmask 31744  }
  0x10   :  { %s49_s16 = sld [smem:[#allocation2 + $0x2]] }
  0x15   :  { %v26_v3 = vstv %s24_s14  ;;  %v31_v4 = vstv %s47_s15 }
  0x16   :  { %v27_v5 = vmul.f32 %v26_v3, %v25_v0  ;;  %v32_v6 = vmul.f32 %v48_v1, %v31_v4  ;;  %v37_v7 = vstv %s49_s16 }
  0x17   :  { %v38_v8 = vmul.f32 %v50_v2, %v37_v7 }
  0x18   :  { %v33_v9 = vadd.f32 %v32_v6, %v27_v5 }
  0x1a   :  { %v39_v10 = vadd.f32 %v38_v8, %v33_v9 }
  0x1c   :  { %41 = vst.msk [vmem:[%s99_s2] sm:$0xff] %vm40_vm0, %v39_v10 }
  0x1d   :  { %46 = vsyncpa [#allocation3], 1 }

</bundles_post_ra>
